<compile_context>
chip_gen: v7x
topology: tpu7x:2x2x1
jax: 0.10.0
libtpu: 0.0.40
codegen_flags: <defaults>
</compile_context>

<pallas_src>
import jax
import jax.numpy as jnp
from jax.experimental import pallas as pl
from jax.experimental.pallas import tpu as pltpu


# ---------------------------------------------------------------------------
# Kernels
# ---------------------------------------------------------------------------
def _mm_kernel_bias(x_ref, w_ref, b_ref, o_ref, acc_ref):
    """Multi-k-step tile. grid = (i, j, k); k (reduction) is the last axis.

    x_ref : (tm, tk)  activation slab (streaming dtype, e.g. bf16)
    w_ref : (tk, tn)  fused weight slab (streaming dtype)
    b_ref : (1,  tn)  bias slab (f32)
    o_ref : (tm, tn)  output tile
    acc_ref: (tm, tn) f32 accumulator scratch (persists across k steps)
    """
    k = pl.program_id(2)

    @pl.when(k == 0)
    def _init():
        # Fold the bias into the accumulator init -> added exactly once.
        acc_ref[...] = jnp.broadcast_to(b_ref[...].astype(jnp.float32),
                                        acc_ref.shape)

    acc_ref[...] += jnp.dot(x_ref[...], w_ref[...],
                            preferred_element_type=jnp.float32)

    @pl.when(k == pl.num_programs(2) - 1)
    def _store():
        o_ref[...] = acc_ref[...].astype(o_ref.dtype)


def _mm_kernel_nobias(x_ref, w_ref, o_ref, acc_ref):
    k = pl.program_id(2)

    @pl.when(k == 0)
    def _init():
        acc_ref[...] = jnp.zeros_like(acc_ref)

    acc_ref[...] += jnp.dot(x_ref[...], w_ref[...],
                            preferred_element_type=jnp.float32)

    @pl.when(k == pl.num_programs(2) - 1)
    def _store():
        o_ref[...] = acc_ref[...].astype(o_ref.dtype)


def _mm_kernel_bias_single_k(x_ref, w_ref, b_ref, o_ref):
    """Single-k-step fast path: no accumulator scratch, no pl.when branches."""
    acc = jnp.dot(x_ref[...], w_ref[...], preferred_element_type=jnp.float32)
    o_ref[...] = (acc + b_ref[...].astype(jnp.float32)).astype(o_ref.dtype)


def _mm_kernel_nobias_single_k(x_ref, w_ref, o_ref):
    o_ref[...] = jnp.dot(x_ref[...], w_ref[...],
                         preferred_element_type=jnp.float32).astype(o_ref.dtype)


# ---------------------------------------------------------------------------
# Helpers
# ---------------------------------------------------------------------------
def _round_up(x, m):
    return ((x + m - 1) // m) * m


def _largest_aligned_divisor(total, cap):
    """Largest multiple-of-128 divisor of `total` (a multiple of 128) <= cap.

    Starting from the full padded dims and shrinking through divisors keeps
    tiles 256-aligned whenever the dims are (v6e/v7x 256x256 MXU).
    """
    cap = max(128, min(cap, total))
    best = 128
    t = 128
    while t <= cap:
        if total % t == 0:
            best = t
        t += 128
    return best


def _device_budgets():
    """(is_v7x, per-step working-set budget, vmem request cap)."""
    kind = ""
    try:
        kind = jax.devices()[0].device_kind.lower()
    except Exception:
        pass
    is_v7 = "v7" in kind
    if is_v7:
        # v7x: 64 MiB physical VMEM per TensorCore -> smaller safe tiles.
        return True, 24 * 1024 * 1024, 48 * 1024 * 1024
    # v5e / v6e: 128 MiB physical VMEM -> take the biggest tiles that fit.
    return False, 48 * 1024 * 1024, 96 * 1024 * 1024


# ---------------------------------------------------------------------------
# Parameter preparation (do ONCE at module init / parameter load)
# ---------------------------------------------------------------------------
def prepare_cond_layers_params(w_expr, b_expr, w_cond, *, n_in, n_cond, bias,
                               dtype=jnp.bfloat16):
    """Fuse + transpose + pad the weights once, hoisted out of the fwd path.

    w_expr : (n_out, n_in)    PyTorch layout (out, in)
    b_expr : (n_out,) or None
    w_cond : (n_out, n_cond)  PyTorch layout, or None if n_cond == 0
    dtype  : HBM-streaming dtype for W and x (bf16 default; bias/accum stay f32).
    """
    n_out = int(w_expr.shape[0])
    K = n_in + n_cond

    w_expr = jnp.asarray(w_expr, jnp.float32)
    if n_cond != 0:
        w_cond = jnp.asarray(w_cond, jnp.float32)
        w_fused = jnp.concatenate([w_expr, w_cond], axis=1).T   # (K, n_out)
    else:
        w_fused = w_expr.T                                      # (n_in, n_out)

    K_pad = _round_up(K, 128)
    N_pad = _round_up(n_out, 128)
    w_padded = jnp.zeros((K_pad, N_pad), dtype).at[:K, :n_out].set(
        w_fused.astype(dtype))

    have_bias = bool(bias and b_expr is not None)
    b2d = None
    if have_bias:
        b2d = jnp.zeros((1, N_pad), jnp.float32).at[0, :n_out].set(
            jnp.asarray(b_expr, jnp.float32))

    return {
        "w": w_padded, "b": b2d,
        "n_out": n_out, "K": K, "K_pad": K_pad, "N_pad": N_pad,
        "bias": have_bias, "dtype": jnp.dtype(dtype),
    }


# ---------------------------------------------------------------------------
# Forward
# ---------------------------------------------------------------------------
def cond_layers_forward(x, params, *, tm_max=256, vmem_budget_bytes=None):
    """x: (B, n_in + n_cond).  Returns (B, n_out) in x.dtype."""
    B, K_x = x.shape
    K, K_pad, N_pad = params["K"], params["K_pad"], params["N_pad"]
    n_out = params["n_out"]
    cdtype = params["dtype"]
    have_bias = params["bias"]
    assert K_x == K, f"expected x with {K} features, got {K_x}"

    x_isz = w_isz = cdtype.itemsize
    out_dtype = x.dtype
    out_isz = jnp.dtype(out_dtype).itemsize

    # Batch tile: sublane-packed for the streaming dtype (f32->8, bf16->16).
    sublane = 8 * max(1, 4 // x_isz)
    tm = min(tm_max, _round_up(B, sublane))
    B_pad = _round_up(B, tm)

    # Device-aware budgets.
    is_v7, budget, vmem_cap = _device_budgets()
    if vmem_budget_bytes is not None:
        budget = vmem_budget_bytes

    def working_set(tk_, tn_, single_k_):
        ws = (2 * tm * tk_ * x_isz + 2 * tk_ * tn_ * w_isz
              + 2 * tm * tn_ * out_isz)
        if have_bias:
            ws += 2 * tn_ * 4
        if not single_k_:
            ws += tm * tn_ * 4              # f32 accumulator scratch
        return ws

    # Prefer tn = N_pad (x streamed once) and tk = K_pad (single k step);
    # shrink tk first, then tn, until the working set fits the budget.
    tk, tn = K_pad, N_pad
    while working_set(tk, tn, tk == K_pad) > budget:
        if tk > 128:
            tk = _largest_aligned_divisor(K_pad, tk // 2)
        elif tn > 128:
            tn = _largest_aligned_divisor(N_pad, tn // 2)
        else:
            break

    # v7x has 2 TensorCores: make sure the "parallel" axes expose >= 2 blocks.
    if is_v7 and (B_pad // tm) * (N_pad // tn) < 2 and N_pad % 256 == 0:
        tn = min(tn, N_pad // 2)

    single_k = (tk == K_pad)

    # Aligned fast path: no padded HBM copy of the activations, cast only.
    if B_pad == B and K_pad == K:
        x_p = x.astype(cdtype)
    else:
        x_p = jnp.zeros((B_pad, K_pad), cdtype).at[:B, :K].set(x.astype(cdtype))

    # VMEM request sized from the actual tile plan (+ headroom), per-chip cap.
    vmem_limit = int(min(vmem_cap,
                         working_set(tk, tn, single_k) + 16 * 1024 * 1024))

    inputs = [x_p, params["w"]]
    if single_k:
        grid = (B_pad // tm, N_pad // tn)
        in_specs = [pl.BlockSpec((tm, K_pad), lambda i, j: (i, 0)),
                    pl.BlockSpec((K_pad, tn), lambda i, j: (0, j))]
        if have_bias:
            in_specs.append(pl.BlockSpec((1, tn), lambda i, j: (0, j)))
            inputs.append(params["b"])
            kernel = _mm_kernel_bias_single_k
        else:
            kernel = _mm_kernel_nobias_single_k
        out_spec = pl.BlockSpec((tm, tn), lambda i, j: (i, j))
        scratch = []
        dims = ("parallel", "parallel")
    else:
        grid = (B_pad // tm, N_pad // tn, K_pad // tk)
        in_specs = [pl.BlockSpec((tm, tk), lambda i, j, k: (i, k)),
                    pl.BlockSpec((tk, tn), lambda i, j, k: (k, j))]
        if have_bias:
            in_specs.append(pl.BlockSpec((1, tn), lambda i, j, k: (0, j)))
            inputs.append(params["b"])
            kernel = _mm_kernel_bias
        else:
            kernel = _mm_kernel_nobias
        out_spec = pl.BlockSpec((tm, tn), lambda i, j, k: (i, j))
        scratch = [pltpu.VMEM((tm, tn), jnp.float32)]
        dims = ("parallel", "parallel", "arbitrary")

    # TODO(synk): if an xprof trace on v5e still shows exposed weight DMA at
    # tile boundaries, set pipeline_mode=pl.Buffered(3) on the weight BlockSpec.
    out = pl.pallas_call(
        kernel,
        out_shape=jax.ShapeDtypeStruct((B_pad, N_pad), out_dtype),
        grid_spec=pltpu.PrefetchScalarGridSpec(
            num_scalar_prefetch=0,
            grid=grid,
            in_specs=in_specs,
            out_specs=out_spec,
            scratch_shapes=scratch,
        ),
        compiler_params=pltpu.CompilerParams(
            dimension_semantics=dims,
            vmem_limit_bytes=vmem_limit,
        ),
    )(*inputs)

    return out[:B, :n_out]


# ---------------------------------------------------------------------------
# Pure-JAX reference (matches the PyTorch module)
# ---------------------------------------------------------------------------
def cond_layers_reference(x, w_expr, b_expr, w_cond, *, n_in, n_cond, bias):
    if n_cond == 0:
        out = x @ w_expr.T
    else:
        expr = x[:, :n_in]
        cond = x[:, n_in:]
        out = expr @ w_expr.T + cond @ w_cond.T
    if bias and b_expr is not None:
        out = out + b_expr
    return out


if __name__ == "__main__":
    key = jax.random.PRNGKey(0)

    def make_module_params(k, n_in, n_out, n_cond):
        kwe, kbe, kwc = jax.random.split(k, 3)
        lim_e = 1.0 / (n_in ** 0.5)
        w_e = jax.random.uniform(kwe, (n_out, n_in), jnp.float32, -lim_e, lim_e)
        b_e = jax.random.uniform(kbe, (n_out,), jnp.float32, -lim_e, lim_e)
        w_c = None
        if n_cond:
            lim_c = 1.0 / (n_cond ** 0.5)
            w_c = jax.random.uniform(kwc, (n_out, n_cond), jnp.float32,
                                     -lim_c, lim_c)
        return w_e, b_e, w_c

    def check(out, ref, atol, rtol, name):
        out = jax.block_until_ready(out)
        assert out.shape == ref.shape, f"{name}: {out.shape} vs {ref.shape}"
        assert jnp.allclose(out, ref, atol=atol, rtol=rtol), (
            f"{name}: max |err| = {float(jnp.max(jnp.abs(out - ref)))}")

    # --- 1. default bf16 streaming path (small CondLayers config) ----------
    n_in, n_out, n_cond = 32, 32, 4
    k0, k1 = jax.random.split(key)
    w_expr, b_expr, w_cond = make_module_params(k0, n_in, n_out, n_cond)
    x = jax.random.normal(k1, (4, n_in + n_cond), jnp.float32)
    ref = cond_layers_reference(x, w_expr, b_expr, w_cond,
                                n_in=n_in, n_cond=n_cond, bias=True)
    p_bf16 = prepare_cond_layers_params(w_expr, b_expr, w_cond,
                                        n_in=n_in, n_cond=n_cond, bias=True)
    check(cond_layers_forward(x, p_bf16), ref, 5e-2, 5e-2, "bf16")

    # --- 2. f32 streaming path: matches reference tightly -------------------
    p_f32 = prepare_cond_layers_params(w_expr, b_expr, w_cond,
                                       n_in=n_in, n_cond=n_cond, bias=True,
                                       dtype=jnp.float32)
    check(cond_layers_forward(x, p_f32), ref, 1e-5, 1e-5, "f32")

    # --- 3. n_cond == 0 branch ----------------------------------------------
    p_nc0 = prepare_cond_layers_params(w_expr, b_expr, None,
                                       n_in=n_in, n_cond=0, bias=True,
                                       dtype=jnp.float32)
    ref0 = cond_layers_reference(x[:, :n_in], w_expr, b_expr, None,
                                 n_in=n_in, n_cond=0, bias=True)
    check(cond_layers_forward(x[:, :n_in], p_nc0), ref0, 1e-5, 1e-5, "n_cond=0")

    # --- 4. bias = False branch ---------------------------------------------
    p_nb = prepare_cond_layers_params(w_expr, None, w_cond,
                                      n_in=n_in, n_cond=n_cond, bias=False,
                                      dtype=jnp.float32)
    ref_nb = cond_layers_reference(x, w_expr, None, w_cond,
                                   n_in=n_in, n_cond=n_cond, bias=False)
    check(cond_layers_forward(x, p_nb), ref_nb, 1e-5, 1e-5, "no-bias")

    # --- 5. multi-k accumulator path (tiny VMEM budget forces K tiling) -----
    n_in2, n_out2, n_cond2, B2 = 300, 200, 20, 24
    k2, k3 = jax.random.split(k1)
    w_expr2, b_expr2, w_cond2 = make_module_params(k2, n_in2, n_out2, n_cond2)
    x2 = jax.random.normal(k3, (B2, n_in2 + n_cond2), jnp.float32)
    ref2 = cond_layers_reference(x2, w_expr2, b_expr2, w_cond2,
                                 n_in=n_in2, n_cond=n_cond2, bias=True)
    p2_f32 = prepare_cond_layers_params(w_expr2, b_expr2, w_cond2,
                                        n_in=n_in2, n_cond=n_cond2, bias=True,
                                        dtype=jnp.float32)
    check(cond_layers_forward(x2, p2_f32, vmem_budget_bytes=256 * 1024),
          ref2, 1e-4, 1e-5, "multi-k f32")
    p2_bf16 = prepare_cond_layers_params(w_expr2, b_expr2, w_cond2,
                                         n_in=n_in2, n_cond=n_cond2, bias=True)
    check(cond_layers_forward(x2, p2_bf16, vmem_budget_bytes=256 * 1024),
          ref2, 5e-2, 5e-2, "multi-k bf16")

    # --- 6. aligned fast path (no padded activation copy) -------------------
    n_in3, n_out3, n_cond3, B3 = 124, 64, 4, 32
    k4, k5 = jax.random.split(k3)
    w_expr3, b_expr3, w_cond3 = make_module_params(k4, n_in3, n_out3, n_cond3)
    x3 = jax.random.normal(k5, (B3, n_in3 + n_cond3), jnp.float32)
    ref3 = cond_layers_reference(x3, w_expr3, b_expr3, w_cond3,
                                 n_in=n_in3, n_cond=n_cond3, bias=True)
    p3 = prepare_cond_layers_params(w_expr3, b_expr3, w_cond3,
                                    n_in=n_in3, n_cond=n_cond3, bias=True)
    check(cond_layers_forward(x3, p3), ref3, 5e-2, 5e-2, "aligned bf16")

    print("KERNEL_OK")
</pallas_src>

<mosaic_0001>
module attributes {stable_mosaic.version = 11 : i64} {
  func.func @_mm_kernel_bias_single_k(%arg0: i32, %arg1: i32, %arg2: memref<16x128xbf16, #tpu.memory_space<vmem>>, %arg3: memref<128x128xbf16, #tpu.memory_space<vmem>>, %arg4: memref<1x128xf32, #tpu.memory_space<vmem>>, %arg5: memref<16x128xf32, #tpu.memory_space<vmem>>) attributes {dimension_semantics = [#tpu.dimension_semantics<parallel>, #tpu.dimension_semantics<parallel>], iteration_bounds = array<i64: 1, 1>, scalar_prefetch = 0 : i64, scratch_operands = 0 : i64, tpu.core_type = #tpu.core_type<tc>, window_params = [{transform_indices = @transform_0, window_bounds = array<i64: 16, 128>}, {transform_indices = @transform_1, window_bounds = array<i64: 128, 128>}, {transform_indices = @transform_2, window_bounds = array<i64: 1, 128>}, {transform_indices = @transform_3, window_bounds = array<i64: 16, 128>}]} {
    %c0 = arith.constant 0 : index
    %c0_0 = arith.constant 0 : index
    %0 = vector.load %arg2[%c0, %c0_0] : memref<16x128xbf16, #tpu.memory_space<vmem>>, vector<16x128xbf16>
    %c0_1 = arith.constant 0 : index
    %c0_2 = arith.constant 0 : index
    %1 = vector.load %arg3[%c0_1, %c0_2] : memref<128x128xbf16, #tpu.memory_space<vmem>>, vector<128x128xbf16>
    %cst = arith.constant dense<0.000000e+00> : vector<16x128xf32>
    %2 = tpu.matmul %0, %1, %cst {dimension_numbers = #tpu.dot_dimension_numbers<[1], [0], [0], [1], [0, 0, 1, 1], [], []>} : vector<16x128xbf16>, vector<128x128xbf16>, vector<16x128xf32> -> vector<16x128xf32>
    %c0_3 = arith.constant 0 : index
    %c0_4 = arith.constant 0 : index
    %3 = vector.load %arg4[%c0_3, %c0_4] : memref<1x128xf32, #tpu.memory_space<vmem>>, vector<1x128xf32>
    %4 = vector.broadcast %3 : vector<1x128xf32> to vector<16x128xf32>
    %5 = arith.addf %2, %4 : vector<16x128xf32>
    %c0_5 = arith.constant 0 : index
    %c0_6 = arith.constant 0 : index
    %6 = vector.load %arg5[%c0_5, %c0_6] : memref<16x128xf32, #tpu.memory_space<vmem>>, vector<16x128xf32>
    tpu.vector_store %arg5[%c0_5, %c0_6], %5 {strides = array<i32>} : memref<16x128xf32, #tpu.memory_space<vmem>>, vector<16x128xf32>,
    return
  }
  func.func @transform_0(%arg0: i32, %arg1: i32) -> (i32, i32) {
    %c0_i32 = arith.constant 0 : i32
    %c0_i32_0 = arith.constant 0 : i32
    return %arg0, %c0_i32 : i32, i32
  }
  func.func @transform_1(%arg0: i32, %arg1: i32) -> (i32, i32) {
    %c0_i32 = arith.constant 0 : i32
    %c0_i32_0 = arith.constant 0 : i32
    return %c0_i32, %arg1 : i32, i32
  }
  func.func @transform_2(%arg0: i32, %arg1: i32) -> (i32, i32) {
    %c0_i32 = arith.constant 0 : i32
    %c0_i32_0 = arith.constant 0 : i32
    return %c0_i32, %arg1 : i32, i32
  }
  func.func @transform_3(%arg0: i32, %arg1: i32) -> (i32, i32) {
    %c0_i32 = arith.constant 0 : i32
    return %arg0, %arg1 : i32, i32
  }
}

</mosaic_0001>

<bundles_post_ra>
// kernel: tpu_custom_call.1
= control target key start
LH: loop header
LB: loop body
LE: loop exit
PB: predicated region body
PF: predicated region fallthrough
CT: control target
= control target key end

     0   :  { %8 = vsyncpa [#allocation3], 0  ;;  %s381_s0 = inlined_call_operand.hbm [shape: bf16[16,128], index: 0, kind: input, shape index: {}]   ;;  %s382_s1 = inlined_call_operand.hbm [shape: bf16[128,128], index: 1, kind: input, shape index: {}]   ;;  %s383_s2 = inlined_call_operand.vmem [shape: f32[1,128], index: 2, kind: input, shape index: {}]   ;;  %s384_s3 = inlined_call_operand.hbm [shape: f32[16,128], index: 3, kind: output, shape index: {}]  }
   0x1   :  { %9 = vsyncpa [#allocation6], 0 }
   0x2   :  { %10 = vsyncpa [#allocation4], 0  ;;  %s313_s12 = smov [#allocation2]   ;;  %s241_s16 = scalar_lea.hbm %s381_s0, 128 }
   0x3   :  { %s16_s13 = sshll.u32 %s313_s12, 4  ;;  %p242_p0 = scmp.ne.s32.totalorder %s381_s0, %s241_s16  ;;  %s17_s13 = int_to_ptr.vmem [resolvable:$true] %s16_s13 }
   0x4   :  { %p245_p1 = scmp.lt.u32.totalorder %s241_s16, %s381_s0 }
   0x6   :  { %p247_p2 = pnand %p245_p1, %p242_p0 }
   0x8   :  { %250 = shalt.err (!%p247_p2)
}
   0x9   :  { %s251_s21 = scalar_lea.vmem %s17_s13, 128  ;;  %p256_p4 = scmp.lt.s32.totalorder %s17_s13, %s17_s13 }
   0xa   :  { %p252_p3 = scmp.ne.s32.totalorder %s17_s13, %s251_s21  ;;  %p257_p5 = scmp.lt.s32.totalorder %s251_s21, %s251_s21 }
   0xc   :  { %p258_p6 = por %p257_p5, %p256_p4 }
   0xe   :  { %p259_p7 = pnand %p258_p6, %p252_p3 }
  0x10   :  { %262 = shalt.err (!%p259_p7)
}
  0x11   :  { %s314_s22 = smov 64   ;;  %s315_s23 = smov 4  }
  0x12   :  { %22 = dma.hbm_to_vmem [thread:$0]  %s381_s0, 128, %s17_s13, [#allocation3], %s314_s22, %s314_s22, %s315_s23  }
  0x13   :  { %s316_s26 = smov [#allocation5]   ;;  %s263_s30 = scalar_lea.hbm %s382_s1, 1024 }
  0x14   :  { %s28_s27 = sshll.u32 %s316_s26, 4  ;;  %p264_p8 = scmp.ne.s32.totalorder %s382_s1, %s263_s30  ;;  %s29_s27 = int_to_ptr.vmem [resolvable:$true] %s28_s27 }
  0x15   :  { %p267_p9 = scmp.lt.u32.totalorder %s263_s30, %s382_s1 }
  0x17   :  { %p269_p10 = pnand %p267_p9, %p264_p8 }
  0x19   :  { %272 = shalt.err (!%p269_p10)
}
  0x1a   :  { %s273_s8 = scalar_lea.vmem %s29_s27, 1024  ;;  %p278_p12 = scmp.lt.s32.totalorder %s29_s27, %s29_s27 }
  0x1b   :  { %p274_p11 = scmp.ne.s32.totalorder %s29_s27, %s273_s8  ;;  %p279_p13 = scmp.lt.s32.totalorder %s273_s8, %s273_s8 }
  0x1d   :  { %p280_p0 = por %p279_p13, %p278_p12 }
  0x1f   :  { %p281_p1 = pnand %p280_p0, %p274_p11 }
  0x21   :  { %284 = shalt.err (!%p281_p1)
}
  0x22   :  { %34 = dma.hbm_to_vmem [thread:$0]  %s382_s1, 1024, %s29_s27, [#allocation6], %s314_s22, %s314_s22, %s315_s23  }
  0x23   :  { %307 = dma.done.wait [#allocation3], 128  }
  0x24   :  { %308 = vsyncadd [#allocation3], 4294967168 }
  0x25   :  { %309 = dma.done.wait [#allocation6], 1024  }
  0x26   :  { %310 = vsyncadd [#allocation6], 4294966272  ;;  %v317_v0 = vmov 0.0   ;;  %vm318_vm0 = vmmov 0   ;;  %v232_v1 = vld [vmem:[#allocation5] sm:$0xff]   ;;  %v233_v2 = vld [vmem:[#allocation5 + $0x8] sm:$0xff]  }
  0x27   :  { %203 = vmatprep.subr.bf16.mxu0 %v317_v0  ;;  %219 = vmatprep.mubr.msk.bf16.mxu0 %vm318_vm0, %v317_v0  ;;  %v234_v3 = vld [vmem:[#allocation5 + $0x10] sm:$0xff]   ;;  %v235_v4 = vld [vmem:[#allocation5 + $0x18] sm:$0xff]   ;;  %v236_v5 = vld [vmem:[#allocation5 + $0x20] sm:$0xff]   ;;  %s319_s11 = smov [#allocation7]  }
  0x28   :  { %204 = vmatpush3.bf16.msra.mxu0 %v232_v1  ;;  %v237_v6 = vld [vmem:[#allocation5 + $0x28] sm:$0xff]   ;;  %v238_v7 = vld [vmem:[#allocation5 + $0x30] sm:$0xff]   ;;  %v239_v8 = vld [vmem:[#allocation5 + $0x38] sm:$0xff]   ;;  %s171_s12 = sshll.u32 %s319_s11, 4  ;;  %s172_s12 = int_to_ptr.vmem [resolvable:$true] %s171_s12 }
  0x29   :  { %205 = vmatprep.subr.bf16.mxu0 %v317_v0  ;;  %v240_v9 = vld [vmem:[#allocation2] sm:$0xff]   ;;  %s285_s13 = scalar_lea.vmem %s172_s12, 256  ;;  %p290_p3 = scmp.lt.s32.totalorder %s172_s12, %s172_s12 }
  0x2a   :  { %v184_v10 = vld [vmem:[%s383_s2] ss:$0 sm:$0xff]  ;;  %p286_p2 = scmp.ne.s32.totalorder %s172_s12, %s285_s13  ;;  %p291_p4 = scmp.lt.s32.totalorder %s285_s13, %s285_s13 }
  0x2c   :  { %206 = vmatpush3.bf16.msra.mxu0 %v233_v2  ;;  %p292_p5 = por %p291_p4, %p290_p3 }
  0x2d   :  { %207 = vmatprep.subr.bf16.mxu0 %v317_v0 }
  0x2e   :  { %p293_p6 = pnand %p292_p5, %p286_p2 }
  0x30   :  { %208 = vmatpush3.bf16.msra.mxu0 %v234_v3 }
  0x31   :  { %209 = vmatprep.subr.bf16.mxu0 %v317_v0 }
  0x34   :  { %210 = vmatpush3.bf16.msra.mxu0 %v235_v4 }
  0x35   :  { %211 = vmatprep.subr.bf16.mxu0 %v317_v0 }
  0x38   :  { %212 = vmatpush3.bf16.msra.mxu0 %v236_v5 }
  0x39   :  { %213 = vmatprep.subr.bf16.mxu0 %v317_v0 }
  0x3c   :  { %214 = vmatpush3.bf16.msra.mxu0 %v237_v6 }
  0x3d   :  { %215 = vmatprep.subr.bf16.mxu0 %v317_v0 }
  0x40   :  { %216 = vmatpush3.bf16.msra.mxu0 %v238_v7 }
  0x41   :  { %217 = vmatprep.subr.bf16.mxu0 %v317_v0 }
  0x44   :  { %218 = vmatpush3.bf16.msra.mxu0 %v239_v8 }
  0x47   :  { %220 = vmatmul.mubr.bf16.vlgmr.msra.gmra.mrb[0].mxu0 %v240_v9 }
 0x11a   :  { %v157_v11 = vpop.f32.mrb[0].mxu0 }
 0x11b   :  { %v158_v12 = vadd.f32 %v184_v10, %v157_v11  ;;  %v221_v13 = vpop.f32.mrb[1].mxu0 }
 0x11c   :  { %v160_v14 = vpop.f32.mrb[2].mxu0 }
 0x11d   :  { %164 = vst [vmem:[#allocation7] sm:$0xff] %v158_v12  ;;  %v161_v15 = vadd.f32 %v184_v10, %v160_v14  ;;  %v222_v16 = vpop.f32.mrb[3].mxu0 }
 0x11f   :  { %165 = vst [vmem:[#allocation7 + $0x8] sm:$0xff] %v161_v15 }
 0x120   :  { %296 = shalt.err (!%p293_p6)
}
 0x121   :  { %s297_s15 = scalar_lea.hbm %s384_s3, 256 }
 0x122   :  { %p298_p7 = scmp.ne.s32.totalorder %s384_s3, %s297_s15  ;;  %p301_p8 = scmp.lt.u32.totalorder %s297_s15, %s384_s3 }
 0x124   :  { %p303_p9 = pnand %p301_p8, %p298_p7 }
 0x126   :  { %306 = shalt.err (!%p303_p9)
}
 0x127   :  { %s320_s20 = smov 128   ;;  %s321_s21 = smov 8  }
 0x128   :  { %177 = dma.vmem_to_hbm [thread:$0]  %s172_s12, 256, %s384_s3, [#allocation4], %s320_s20, %s320_s20, %s321_s21  }
 0x129   :  { %311 = dma.done.wait [#allocation4], 256  }
 0x12a   :  { %312 = vsyncadd [#allocation4], 4294967040 }
 0x12b   :  { %181 = vsyncpa [#allocation3], 1 }
 0x12c   :  { %182 = vsyncpa [#allocation6], 1 }
 0x12d   :  { %183 = vsyncpa [#allocation4], 1 }

</bundles_post_ra>
